<compile_context>
chip_gen: v6e
topology: v6e:2x2x1
jax: 0.10.0
libtpu: 0.0.40
codegen_flags: <defaults>
</compile_context>

<pallas_src>
import functools

import jax
import jax.numpy as jnp
from jax.experimental import pallas as pl
from jax.experimental.pallas import tpu as pltpu

HID_SIZE = 128


def _round_up(n: int, m: int) -> int:
    return ((n + m - 1) // m) * m


def _a2c_kernel(x_ref, wb_ref, bb_ref, wh_ref, bh_ref, out_ref, *, act_size):
    # base: Linear(obs, HID_SIZE) + ReLU  -- one MXU pass, f32 accumulation.
    h = jnp.dot(x_ref[...], wb_ref[...], preferred_element_type=jnp.float32)
    h = jnp.maximum(h + bb_ref[...], 0.0)

    # fused heads: one lane-dense MXU pass; columns = [mu | var | value | pad].
    h = h.astype(wh_ref.dtype)  # bf16 second pass when compute dtype is bf16
    y = jnp.dot(h, wh_ref[...], preferred_element_type=jnp.float32) + bh_ref[...]

    # per-lane activation select: tanh on mu lanes, stable softplus on var lanes,
    # identity on the value lane and on the zero padding.
    lane = jax.lax.broadcasted_iota(jnp.int32, y.shape, 1)
    tanh_y = jnp.tanh(y)
    softplus_y = jnp.log1p(jnp.exp(-jnp.abs(y))) + jnp.maximum(y, 0.0)
    out = jnp.where(lane < act_size, tanh_y,
                    jnp.where(lane < 2 * act_size, softplus_y, y))
    out_ref[...] = out.astype(out_ref.dtype)


def pack_params(params, compute_dtype=jnp.float32):
    """Prepack the three heads into one lane-dense (HID_SIZE, NH) weight.

    Call ONCE per parameter set (outside the per-step path); the result is the
    object model_a2c_forward consumes every call.
    """
    act = params["w_mu"].shape[1]
    obs = params["w_base"].shape[0]
    NH = _round_up(2 * act + 1, 128)

    w_heads = jnp.zeros((HID_SIZE, NH), jnp.float32)
    w_heads = w_heads.at[:, :act].set(params["w_mu"])
    w_heads = w_heads.at[:, act:2 * act].set(params["w_var"])
    w_heads = w_heads.at[:, 2 * act:2 * act + 1].set(params["w_val"])
    b_heads = jnp.zeros((1, NH), jnp.float32)
    b_heads = b_heads.at[:, :act].set(params["b_mu"].reshape(1, act))
    b_heads = b_heads.at[:, act:2 * act].set(params["b_var"].reshape(1, act))
    b_heads = b_heads.at[:, 2 * act:2 * act + 1].set(params["b_val"].reshape(1, 1))

    return dict(
        w_base=params["w_base"].astype(compute_dtype),              # (obs, 128)
        b_base=params["b_base"].reshape(1, HID_SIZE).astype(jnp.float32),
        w_heads=w_heads.astype(compute_dtype),                      # (128, NH)
        b_heads=b_heads,                                            # f32 (post-acc add)
        act_size=int(act),
        obs_size=int(obs),
    )


def model_a2c_forward(x, packed, *, batch_tile=2048):
    """x: (B, obs_size). packed: output of pack_params.

    Returns (mu, var, value) matching the PyTorch ModelA2C forward.
    """
    B, obs = x.shape
    act = packed["act_size"]
    assert obs == packed["obs_size"]

    compute_dtype = packed["w_base"].dtype
    out_dtype = compute_dtype
    NH = packed["w_heads"].shape[1]

    # Batch tile: multiple of 8 sublanes, never larger than needed.
    TB = min(_round_up(max(batch_tile, 8), 8), _round_up(B, 8))
    # v7x megacore: if the batch fits in one grid step but can be split, halve
    # the tile so both TensorCores get work (batch axis is the parallel axis).
    if B > 8 and pl.cdiv(B, TB) < 2:
        TB = _round_up(pl.cdiv(B, 2), 8)
    grid = (pl.cdiv(B, TB),)

    x = x.astype(compute_dtype)

    in_bytes = jnp.dtype(compute_dtype).itemsize
    out_bytes = jnp.dtype(out_dtype).itemsize
    weight_bytes = ((obs * HID_SIZE + HID_SIZE * NH) * in_bytes
                    + (HID_SIZE + NH) * 4)
    tile_bytes = TB * (obs * in_bytes + NH * out_bytes)
    # Double-buffered tiles + weights + slack; always well under scoped limits.
    vmem_need = 2 * tile_bytes + 2 * weight_bytes + (2 << 20)
    vmem_limit = int(min(max(vmem_need, 16 << 20), 32 << 20))

    flops = 2 * B * (obs * HID_SIZE + HID_SIZE * NH)
    transcendentals = 3 * B * NH                      # tanh + exp + log1p per lane
    bytes_accessed = B * obs * in_bytes + weight_bytes + B * NH * out_bytes

    out_slab = pl.pallas_call(
        functools.partial(_a2c_kernel, act_size=act),
        out_shape=jax.ShapeDtypeStruct((B, NH), out_dtype),
        grid_spec=pltpu.PrefetchScalarGridSpec(
            num_scalar_prefetch=0,
            grid=grid,
            in_specs=[
                pl.BlockSpec((TB, obs), lambda i: (i, 0)),          # x tile (no pad)
                pl.BlockSpec((obs, HID_SIZE), lambda i: (0, 0)),    # resident weights
                pl.BlockSpec((1, HID_SIZE), lambda i: (0, 0)),
                pl.BlockSpec((HID_SIZE, NH), lambda i: (0, 0)),
                pl.BlockSpec((1, NH), lambda i: (0, 0)),
            ],
            out_specs=pl.BlockSpec((TB, NH), lambda i: (i, 0)),     # lane-dense slab
        ),
        compiler_params=pltpu.CompilerParams(
            dimension_semantics=("parallel",),
            vmem_limit_bytes=vmem_limit),
        cost_estimate=pl.CostEstimate(flops=flops,
                                      transcendentals=transcendentals,
                                      bytes_accessed=bytes_accessed),
    )(x, packed["w_base"], packed["b_base"], packed["w_heads"], packed["b_heads"])

    mu = out_slab[:, :act]
    var = out_slab[:, act:2 * act]
    val = out_slab[:, 2 * act:2 * act + 1]
    return mu, var, val


def init_params(key, obs_size, act_size):
    """Deterministic PyTorch-style (Kaiming-uniform-ish) init, stored as (in, out)."""
    def linear(k, fan_in, fan_out):
        k1, k2 = jax.random.split(k)
        bound = 1.0 / jnp.sqrt(fan_in)
        w = jax.random.uniform(k1, (fan_in, fan_out), jnp.float32, -bound, bound)
        b = jax.random.uniform(k2, (1, fan_out), jnp.float32, -bound, bound)
        return w, b

    k_base, k_mu, k_var, k_val = jax.random.split(key, 4)
    w_base, b_base = linear(k_base, obs_size, HID_SIZE)
    w_mu, b_mu = linear(k_mu, HID_SIZE, act_size)
    w_var, b_var = linear(k_var, HID_SIZE, act_size)
    w_val, b_val = linear(k_val, HID_SIZE, 1)
    return dict(w_base=w_base, b_base=b_base,
                w_mu=w_mu, b_mu=b_mu,
                w_var=w_var, b_var=b_var,
                w_val=w_val, b_val=b_val)


def _reference(x, p):
    h = jnp.maximum(x @ p["w_base"] + p["b_base"], 0.0)
    mu = jnp.tanh(h @ p["w_mu"] + p["b_mu"])
    var = jax.nn.softplus(h @ p["w_var"] + p["b_var"])
    val = h @ p["w_val"] + p["b_val"]
    return mu, var, val


if __name__ == "__main__":
    B, OBS, ACT = 8, 16, 4
    key = jax.random.PRNGKey(0)
    k_x, k_p = jax.random.split(key)
    x = jax.random.normal(k_x, (B, OBS), jnp.float32)
    params = init_params(k_p, OBS, ACT)
    mu_r, var_r, val_r = _reference(x, params)

    # f32 path: exact parity with the reference.
    packed = pack_params(params)            # prepacked once, reused every forward
    mu, var, val = jax.block_until_ready(model_a2c_forward(x, packed))
    assert mu.shape == (B, ACT) and var.shape == (B, ACT) and val.shape == (B, 1)
    assert jnp.allclose(mu, mu_r, atol=1e-5)
    assert jnp.allclose(var, var_r, atol=1e-5)
    assert jnp.allclose(val, val_r, atol=1e-5)

    # Optional bf16 matmul-operand path (halved DMA bytes, looser tolerance).
    packed_bf16 = pack_params(params, compute_dtype=jnp.bfloat16)
    mu_b, var_b, val_b = jax.block_until_ready(model_a2c_forward(x, packed_bf16))
    assert mu_b.shape == (B, ACT) and var_b.shape == (B, ACT) and val_b.shape == (B, 1)
    assert jnp.allclose(mu_b.astype(jnp.float32), mu_r, atol=1e-1)
    assert jnp.allclose(var_b.astype(jnp.float32), var_r, atol=1e-1)
    assert jnp.allclose(val_b.astype(jnp.float32), val_r, atol=1e-1)

    print("KERNEL_OK")
</pallas_src>

<mosaic_0001>
module attributes {stable_mosaic.version = 11 : i64} {
  func.func @_a2c_kernel(%arg0: i32, %arg1: memref<8x16xf32, #tpu.memory_space<vmem>>, %arg2: memref<16x128xf32, #tpu.memory_space<vmem>>, %arg3: memref<1x128xf32, #tpu.memory_space<vmem>>, %arg4: memref<128x128xf32, #tpu.memory_space<vmem>>, %arg5: memref<1x128xf32, #tpu.memory_space<vmem>>, %arg6: memref<8x128xf32, #tpu.memory_space<vmem>>) attributes {dimension_semantics = [#tpu.dimension_semantics<parallel>], iteration_bounds = array<i64: 1>, scalar_prefetch = 0 : i64, scratch_operands = 0 : i64, tpu.core_type = #tpu.core_type<tc>, window_params = [{transform_indices = @transform_0, window_bounds = array<i64: 8, 16>}, {pipeline_mode = #tpu.pipeline_mode<synchronous>, transform_indices = @transform_1, window_bounds = array<i64: 16, 128>}, {pipeline_mode = #tpu.pipeline_mode<synchronous>, transform_indices = @transform_2, window_bounds = array<i64: 1, 128>}, {pipeline_mode = #tpu.pipeline_mode<synchronous>, transform_indices = @transform_3, window_bounds = array<i64: 128, 128>}, {pipeline_mode = #tpu.pipeline_mode<synchronous>, transform_indices = @transform_4, window_bounds = array<i64: 1, 128>}, {transform_indices = @transform_5, window_bounds = array<i64: 8, 128>}]} {
    %c0 = arith.constant 0 : index
    %c0_0 = arith.constant 0 : index
    %0 = vector.load %arg1[%c0, %c0_0] : memref<8x16xf32, #tpu.memory_space<vmem>>, vector<8x16xf32>
    %c0_1 = arith.constant 0 : index
    %c0_2 = arith.constant 0 : index
    %1 = vector.load %arg2[%c0_1, %c0_2] : memref<16x128xf32, #tpu.memory_space<vmem>>, vector<16x128xf32>
    %cst = arith.constant dense<0.000000e+00> : vector<8x128xf32>
    %2 = tpu.matmul %0, %1, %cst {dimension_numbers = #tpu.dot_dimension_numbers<[1], [0], [0], [1], [0, 0, 1, 1], [], []>} : vector<8x16xf32>, vector<16x128xf32>, vector<8x128xf32> -> vector<8x128xf32>
    %c0_3 = arith.constant 0 : index
    %c0_4 = arith.constant 0 : index
    %3 = vector.load %arg3[%c0_3, %c0_4] : memref<1x128xf32, #tpu.memory_space<vmem>>, vector<1x128xf32>
    %4 = vector.broadcast %3 : vector<1x128xf32> to vector<8x128xf32>
    %5 = arith.addf %2, %4 : vector<8x128xf32>
    %cst_5 = arith.constant 0.000000e+00 : f32
    %6 = vector.broadcast %cst_5 : f32 to vector<8x128xf32>
    %7 = arith.maximumf %5, %6 : vector<8x128xf32>
    %c0_6 = arith.constant 0 : index
    %c0_7 = arith.constant 0 : index
    %8 = vector.load %arg4[%c0_6, %c0_7] : memref<128x128xf32, #tpu.memory_space<vmem>>, vector<128x128xf32>
    %cst_8 = arith.constant dense<0.000000e+00> : vector<8x128xf32>
    %9 = tpu.matmul %7, %8, %cst_8 {dimension_numbers = #tpu.dot_dimension_numbers<[1], [0], [0], [1], [0, 0, 1, 1], [], []>} : vector<8x128xf32>, vector<128x128xf32>, vector<8x128xf32> -> vector<8x128xf32>
    %c0_9 = arith.constant 0 : index
    %c0_10 = arith.constant 0 : index
    %10 = vector.load %arg5[%c0_9, %c0_10] : memref<1x128xf32, #tpu.memory_space<vmem>>, vector<1x128xf32>
    %11 = vector.broadcast %10 : vector<1x128xf32> to vector<8x128xf32>
    %12 = arith.addf %9, %11 : vector<8x128xf32>
    %13 = tpu.iota {dimensions = array<i32: 1>} : vector<8x128xi32>
    %14 = math.tanh %12 : vector<8x128xf32>
    %15 = math.absf %12 : vector<8x128xf32>
    %cst_11 = arith.constant 0.000000e+00 : f32
    %16 = vector.broadcast %cst_11 : f32 to vector<8x128xf32>
    %17 = arith.subf %16, %15 : vector<8x128xf32>
    %18 = math.exp %17 : vector<8x128xf32>
    %19 = math.log1p %18 : vector<8x128xf32>
    %cst_12 = arith.constant 0.000000e+00 : f32
    %20 = vector.broadcast %cst_12 : f32 to vector<8x128xf32>
    %21 = arith.maximumf %12, %20 : vector<8x128xf32>
    %22 = arith.addf %19, %21 : vector<8x128xf32>
    %c4_i32 = arith.constant 4 : i32
    %23 = vector.broadcast %c4_i32 : i32 to vector<8x128xi32>
    %24 = arith.cmpi slt, %13, %23 : vector<8x128xi32>
    %c8_i32 = arith.constant 8 : i32
    %25 = vector.broadcast %c8_i32 : i32 to vector<8x128xi32>
    %26 = arith.cmpi slt, %13, %25 : vector<8x128xi32>
    %27 = arith.select %26, %22, %12 : vector<8x128xi1>, vector<8x128xf32>
    %28 = arith.select %24, %14, %27 : vector<8x128xi1>, vector<8x128xf32>
    %c0_13 = arith.constant 0 : index
    %c0_14 = arith.constant 0 : index
    %29 = vector.load %arg6[%c0_13, %c0_14] : memref<8x128xf32, #tpu.memory_space<vmem>>, vector<8x128xf32>
    tpu.vector_store %arg6[%c0_13, %c0_14], %28 {strides = array<i32>} : memref<8x128xf32, #tpu.memory_space<vmem>>, vector<8x128xf32>,
    return
  }
  func.func @transform_0(%arg0: i32) -> (i32, i32) {
    %c0_i32 = arith.constant 0 : i32
    %c0_i32_0 = arith.constant 0 : i32
    return %arg0, %c0_i32 : i32, i32
  }
  func.func @transform_1(%arg0: i32) -> (i32, i32) {
    %c0_i32 = arith.constant 0 : i32
    %c0_i32_0 = arith.constant 0 : i32
    %c0_i32_1 = arith.constant 0 : i32
    return %c0_i32, %c0_i32_0 : i32, i32
  }
  func.func @transform_2(%arg0: i32) -> (i32, i32) {
    %c0_i32 = arith.constant 0 : i32
    %c0_i32_0 = arith.constant 0 : i32
    %c0_i32_1 = arith.constant 0 : i32
    return %c0_i32, %c0_i32_0 : i32, i32
  }
  func.func @transform_3(%arg0: i32) -> (i32, i32) {
    %c0_i32 = arith.constant 0 : i32
    %c0_i32_0 = arith.constant 0 : i32
    %c0_i32_1 = arith.constant 0 : i32
    return %c0_i32, %c0_i32_0 : i32, i32
  }
  func.func @transform_4(%arg0: i32) -> (i32, i32) {
    %c0_i32 = arith.constant 0 : i32
    %c0_i32_0 = arith.constant 0 : i32
    %c0_i32_1 = arith.constant 0 : i32
    return %c0_i32, %c0_i32_0 : i32, i32
  }
  func.func @transform_5(%arg0: i32) -> (i32, i32) {
    %c0_i32 = arith.constant 0 : i32
    %c0_i32_0 = arith.constant 0 : i32
    return %arg0, %c0_i32 : i32, i32
  }
}

</mosaic_0001>

<bundles_post_ra>
// kernel: tpu_custom_call.1
= control target key start
LH: loop header
LB: loop body
LE: loop exit
PB: predicated region body
PF: predicated region fallthrough
CT: control target
= control target key end

     0   :  { %10 = vsyncpa [#allocation3], 0  ;;  %s498_s0 = inlined_call_operand.hbm [shape: f32[8,16], index: 0, kind: input, shape index: {}]   ;;  %s499_s1 = inlined_call_operand.hbm [shape: f32[16,128], index: 1, kind: input, shape index: {}]   ;;  %s500_s2 = inlined_call_operand.vmem [shape: f32[1,128], index: 2, kind: input, shape index: {}]   ;;  %s501_s3 = inlined_call_operand.hbm [shape: f32[128,128], index: 3, kind: input, shape index: {}]   ;;  %s502_s4 = inlined_call_operand.vmem [shape: f32[1,128], index: 4, kind: input, shape index: {}]   ;;  %s503_s5 = inlined_call_operand.hbm [shape: f32[8,128], index: 5, kind: output, shape index: {}]  }
   0x1   :  { %11 = vsyncpa [#allocation6], 0 }
   0x2   :  { %12 = vsyncpa [#allocation4], 0  ;;  %s442_s18 = smov [#allocation5]  }
   0x3   :  { %s28_s19 = sshll.u32 %s442_s18, 4  ;;  %s29_s19 = int_to_ptr.vmem [resolvable:$true] %s28_s19 }
   0x4   :  { %s364_s20 = scalar_lea.vmem %s29_s19, 256  ;;  %p369_p1 = scmp.lt.s32.totalorder %s29_s19, %s29_s19 }
   0x5   :  { %p365_p0 = scmp.ne.s32.totalorder %s29_s19, %s364_s20  ;;  %p370_p2 = scmp.lt.s32.totalorder %s364_s20, %s364_s20 }
   0x7   :  { %p371_p3 = por %p370_p2, %p369_p1 }
   0x9   :  { %p372_p4 = pnand %p371_p3, %p365_p0 }
   0xb   :  { %375 = shalt.err (!%p372_p4)
}
   0xc   :  { %s443_s21 = smov 128   ;;  %s444_s22 = smov 8  }
   0xd   :  { %34 = dma.hbm_to_vmem [thread:$0]  %s499_s1, 256, %s29_s19, [#allocation6], %s443_s21, %s443_s21, %s444_s22  }
   0xe   :  { %s445_s25 = smov [#allocation2]   ;;  %s446_s27 = smov [#allocation7]  }
   0xf   :  { %s19_s26 = sshll.u32 %s445_s25, 4  ;;  %s42_s28 = sshll.u32 %s446_s27, 4  ;;  %s20_s26 = int_to_ptr.vmem [resolvable:$true] %s19_s26  ;;  %s43_s28 = int_to_ptr.vmem [resolvable:$true] %s42_s28 }
  0x10   :  { %s384_s29 = scalar_lea.vmem %s20_s26, 128  ;;  %p389_p6 = scmp.lt.s32.totalorder %s20_s26, %s20_s26 }
  0x11   :  { %p385_p5 = scmp.ne.s32.totalorder %s20_s26, %s384_s29  ;;  %p390_p7 = scmp.lt.s32.totalorder %s384_s29, %s384_s29 }
  0x13   :  { %p391_p8 = por %p390_p7, %p389_p6 }
  0x15   :  { %p392_p9 = pnand %p391_p8, %p385_p5 }
  0x17   :  { %395 = shalt.err (!%p392_p9)
}
  0x18   :  { %22 = dma.hbm_to_vmem [thread:$0]  %s498_s0, 128, %s20_s26, [#allocation3]  }
  0x19   :  { %s404_s7 = scalar_lea.vmem %s43_s28, 2048  ;;  %p409_p11 = scmp.lt.s32.totalorder %s43_s28, %s43_s28 }
  0x1a   :  { %p405_p10 = scmp.ne.s32.totalorder %s43_s28, %s404_s7  ;;  %p410_p12 = scmp.lt.s32.totalorder %s404_s7, %s404_s7 }
  0x1c   :  { %p411_p13 = por %p410_p12, %p409_p11 }
  0x1e   :  { %p412_p0 = pnand %p411_p13, %p405_p10 }
  0x20   :  { %415 = shalt.err (!%p412_p0)
}
  0x21   :  { %48 = dma.hbm_to_vmem [thread:$0]  %s501_s3, 2048, %s43_s28, [#allocation6], %s443_s21, %s443_s21, %s444_s22  }
  0x22   :  { %436 = dma.done.wait [#allocation3], 128  }
  0x23   :  { %437 = vsyncadd [#allocation3], 4294967168 }
  0x24   :  { %438 = dma.done.wait [#allocation6], 2304  }
  0x25   :  { %439 = vsyncadd [#allocation6], 4294964992  ;;  %v447_v0 = vmov 0.0   ;;  %vm448_vm0 = vmmov 0   ;;  %v62_v1 = vld [vmem:[#allocation5 + $0x8] sm:$0xff]  ;;  %v61_v2 = vld [vmem:[#allocation5] sm:$0xff]  ;;  %v238_v35 = vlaneseq }
  0x26   :  { %300 = vmatprep.subr.mxu0 %v447_v0  ;;  %304 = vmatprep.mubr.msk.f32.mxu0 %vm448_vm0, %v447_v0  ;;  %v60_v3 = vld [vmem:[#allocation2] sm:$0xff]  ;;  %vm70_vm1 = vcmask 130048   ;;  %v160_v4 = vld [vmem:[#allocation7 + $0x78] sm:$0xff]  ;;  %v159_v5 = vld [vmem:[#allocation7 + $0x70] sm:$0xff] }
  0x27   :  { %307 = vmatprep.subr.mxu1 %v447_v0  ;;  %339 = vmatprep.mubr.msk.f32.mxu1 %vm448_vm0, %v447_v0  ;;  %v158_v6 = vld [vmem:[#allocation7 + $0x68] sm:$0xff]  ;;  %v157_v7 = vld [vmem:[#allocation7 + $0x60] sm:$0xff]  ;;  %v156_v8 = vld [vmem:[#allocation7 + $0x58] sm:$0xff]  ;;  %v239_v38 = vand.u32 127, %v238_v35 }
  0x28   :  { %301 = vmatpush3.msra.mxu0 %v62_v1  ;;  %308 = vmatpush3.msra.mxu1 %v160_v4  ;;  %v155_v9 = vld [vmem:[#allocation7 + $0x50] sm:$0xff]  ;;  %v154_v10 = vld [vmem:[#allocation7 + $0x48] sm:$0xff]  ;;  %v153_v11 = vld [vmem:[#allocation7 + $0x40] sm:$0xff] }
  0x29   :  { %302 = vmatprep.subr.mxu0 %v447_v0  ;;  %309 = vmatprep.subr.mxu1 %v447_v0  ;;  %v152_v12 = vld [vmem:[#allocation7 + $0x38] sm:$0xff]  ;;  %v151_v13 = vld [vmem:[#allocation7 + $0x30] sm:$0xff]  ;;  %v150_v14 = vld [vmem:[#allocation7 + $0x28] sm:$0xff]  ;;  %vm257_vm3 = vcmp.lt.s32.totalorder %v239_v38, 8  ;;  %vm256_vm4 = vcmp.lt.s32.totalorder %v239_v38, 4 }
  0x2a   :  { %303 = vmatpush3.msra.mxu0 %v61_v2  ;;  %310 = vmatpush3.msra.mxu1 %v159_v5  ;;  %v149_v15 = vld [vmem:[#allocation7 + $0x20] sm:$0xff]  ;;  %v148_v16 = vld [vmem:[#allocation7 + $0x18] sm:$0xff]  ;;  %v147_v17 = vld [vmem:[#allocation7 + $0x10] sm:$0xff] }
  0x2b   :  { %305 = vmatmul.mubr.msk.f32.vlgmr.msra.gmra.mxu0 %vm70_vm1, %v60_v3  ;;  %311 = vmatprep.subr.mxu1 %v447_v0  ;;  %v146_v18 = vld [vmem:[#allocation7 + $0x8] sm:$0xff]  ;;  %v145_v19 = vld [vmem:[#allocation7] sm:$0xff] }
  0x2c   :  { %312 = vmatpush3.msra.mxu1 %v158_v6  ;;  %v277_v20 = vld [vmem:[%s500_s2] ss:$0 sm:$0xff]  ;;  %s449_s2 = smov [#allocation8]  }
  0x2d   :  { %313 = vmatprep.subr.mxu1 %v447_v0  ;;  %v279_v25 = vld [vmem:[%s502_s4] ss:$0 sm:$0xff]  ;;  %s267_s4 = sshll.u32 %s449_s2, 4  ;;  %s268_s4 = int_to_ptr.vmem [resolvable:$true] %s267_s4 }
  0x2e   :  { %314 = vmatpush3.msra.mxu1 %v157_v7  ;;  %s416_s11 = scalar_lea.vmem %s268_s4, 128  ;;  %p421_p2 = scmp.lt.s32.totalorder %s268_s4, %s268_s4 }
  0x2f   :  { %315 = vmatprep.subr.mxu1 %v447_v0  ;;  %p417_p1 = scmp.ne.s32.totalorder %s268_s4, %s416_s11  ;;  %p422_p3 = scmp.lt.s32.totalorder %s416_s11, %s416_s11 }
  0x30   :  { %316 = vmatpush3.msra.mxu1 %v156_v8 }
  0x31   :  { %317 = vmatprep.subr.mxu1 %v447_v0  ;;  %p423_p4 = por %p422_p3, %p421_p2 }
  0x32   :  { %318 = vmatpush3.msra.mxu1 %v155_v9 }
  0x33   :  { %319 = vmatprep.subr.mxu1 %v447_v0  ;;  %p424_p5 = pnand %p423_p4, %p417_p1 }
  0x34   :  { %320 = vmatpush3.msra.mxu1 %v154_v10 }
  0x35   :  { %321 = vmatprep.subr.mxu1 %v447_v0 }
  0x36   :  { %322 = vmatpush3.msra.mxu1 %v153_v11 }
  0x37   :  { %323 = vmatprep.subr.mxu1 %v447_v0 }
  0x38   :  { %324 = vmatpush3.msra.mxu1 %v152_v12 }
  0x39   :  { %325 = vmatprep.subr.mxu1 %v447_v0 }
  0x3a   :  { %326 = vmatpush3.msra.mxu1 %v151_v13 }
  0x3b   :  { %327 = vmatprep.subr.mxu1 %v447_v0 }
  0x3c   :  { %328 = vmatpush3.msra.mxu1 %v150_v14 }
  0x3d   :  { %329 = vmatprep.subr.mxu1 %v447_v0 }
  0x3e   :  { %330 = vmatpush3.msra.mxu1 %v149_v15 }
  0x3f   :  { %331 = vmatprep.subr.mxu1 %v447_v0 }
  0x40   :  { %332 = vmatpush3.msra.mxu1 %v148_v16 }
  0x41   :  { %333 = vmatprep.subr.mxu1 %v447_v0 }
  0x42   :  { %334 = vmatpush3.msra.mxu1 %v147_v17 }
  0x43   :  { %335 = vmatprep.subr.mxu1 %v447_v0 }
  0x44   :  { %336 = vmatpush3.msra.mxu1 %v146_v18 }
  0x45   :  { %337 = vmatprep.subr.mxu1 %v447_v0 }
  0x46   :  { %338 = vmatpush3.msra.mxu1 %v145_v19 }
  0xeb   :  { %v140_v21 = vpop.f32.mrf.mxu0 }
  0xec   :  { %v141_v22 = vadd.f32 %v277_v20, %v140_v21 }
  0xed   :  { %v306_v23 = vpop.f32.mrf.mxu0 }
  0xee   :  { %v144_v24 = vmax.f32 %v141_v22, 0.0 }
  0xf0   :  { %340 = vmatmul.mubr.f32.vlgmr.msra.gmra.mxu1 %v144_v24 }
 0x1b0   :  { %v234_v26 = vpop.f32.mrf.mxu1 }
 0x1b1   :  { %v235_v27 = vadd.f32 %v279_v25, %v234_v26 }
 0x1b2   :  { %v341_v28 = vpop.f32.mrf.mxu1 }
 0x1b3   :  { %v241_v29 = vand.u32 2147483647, %v235_v27  ;;  %v254_v42 = vmax.f32 %v235_v27, 0.0 }
 0x1b5   :  { %v242_v30 = vsub.f32 0.0, %v241_v29 }
 0x1b7   :  { %v243_v31 = vmul.f32 1.442695, %v242_v30 }
 0x1b9   :  { %350 = vpow2.f32 %v243_v31 }
 0x1c6   :  { %v351_v32 = vpop.eup %350 }
 0x1c7   :  { %v245_v33 = vadd.f32 1.0, %v351_v32  ;;  %v248_v34 = vmul.f32 -0.5, %v351_v32  ;;  %v251_v37 = vand.u32 2147483647, %v351_v32 }
 0x1c9   :  { %352 = vlog2.f32 %v245_v33  ;;  %v249_v36 = vadd.f32 1.0, %v248_v34  ;;  %vm252_vm2 = vcmp.lt.f32.partialorder %v251_v37, 0.0004427343 }
 0x1ca   :  { %354 = vtanh.f32 %v235_v27 }
 0x1cb   :  { %v250_v41 = vmul.f32 %v351_v32, %v249_v36 }
 0x1d6   :  { %v353_v39 = vpop.eup %352 }
 0x1d7   :  { %v247_v40 = vmul.f32 0.6931472, %v353_v39  ;;  %v355_v45 = vpop.eup %354 }
 0x1d9   :  { %v253_v43 = vsel %vm252_vm2, %v250_v41, %v247_v40 }
 0x1da   :  { %v255_v44 = vadd.f32 %v254_v42, %v253_v43 }
 0x1dc   :  { %v258_v46 = vsel %vm257_vm3, %v255_v44, %v235_v27 }
 0x1dd   :  { %v259_v47 = vsel %vm256_vm4, %v355_v45, %v258_v46 }
 0x1de   :  { %260 = vst [vmem:[#allocation8] sm:$0xff] %v259_v47 }
 0x1df   :  { %427 = shalt.err (!%p424_p5)
}
 0x1e0   :  { %270 = dma.vmem_to_hbm [thread:$0]  %s268_s4, 128, %s503_s5, [#allocation4]  }
 0x1e1   :  { %440 = dma.done.wait [#allocation4], 128  }
 0x1e2   :  { %441 = vsyncadd [#allocation4], 4294967168 }
 0x1e3   :  { %274 = vsyncpa [#allocation3], 1 }
 0x1e4   :  { %275 = vsyncpa [#allocation6], 1 }
 0x1e5   :  { %276 = vsyncpa [#allocation4], 1 }

</bundles_post_ra>
